<compile_context>
chip_gen: v5e
topology: v5e:2x2
jax: 0.10.0
libtpu: 0.0.40
codegen_flags: <defaults>
</compile_context>

<pallas_src>
import jax
import jax.numpy as jnp
from jax.experimental import pallas as pl
from jax.experimental.pallas import tpu as pltpu


def qnet_kernel(beta2_ref, beta3_ref, bias_ref,
                node_ref, agg_ref, w_agg_ref, w_node_ref, out_ref):
    # Scalars live in SMEM.
    b2 = beta2_ref[0]
    b3 = beta3_ref[0]
    bias = bias_ref[0]

    # Elementwise scale + ReLU (VPU).  Betas stay inside the ReLU (they may
    # be negative for trained params), so they are NOT folded into weights.
    r_agg = jnp.maximum(b2 * agg_ref[...], 0.0)     # (tile, D)
    r_node = jnp.maximum(b3 * node_ref[...], 0.0)   # (tile, D)

    # Matvec against the two halves of the weight-normalized fc weight.
    # Single fused cross-lane reduction: one XLU reduce instead of two; the
    # extra elementwise add co-issues in the 4-wide VALU slot.
    acc = jnp.sum(r_agg * w_agg_ref[...] + r_node * w_node_ref[...],
                  axis=1, keepdims=True)            # (tile, 1) f32

    # Lane-dense store: relayout (tile, 1) -> (1, tile) row (XLU; hides under
    # the input DMA) so the output block writes full 128-lane vregs.
    out_ref[...] = (acc + bias).reshape(out_ref.shape)


def qnet_forward(params, node_embed, agg_embed, *, tile_b=16384):
    B, D = node_embed.shape
    assert agg_embed.shape == (B, D)

    # weight_norm(dim=0): w = g * v / ||v||   (per output row; here 1 row)
    v = params["weight_v"]                                     # (1, 2D)
    g = params["weight_g"]                                     # (1, 1)
    w_eff = g * v / jnp.linalg.norm(v, axis=1, keepdims=True)  # (1, 2D)
    w_agg = w_eff[:, :D]                                       # (1, D) * scaled_agg
    w_node = w_eff[:, D:]                                      # (1, D) * scaled_node

    beta2 = params["beta2"].astype(jnp.float32)                # (1,)
    beta3 = params["beta3"].astype(jnp.float32)                # (1,)
    bias = params["bias"].astype(jnp.float32)                  # (1,)

    # Batch tiling: full-extent single block for small B (legal for any B),
    # otherwise tile_b rows per grid step with a Pallas-handled partial tail
    # block (no jnp.pad copy).
    if B > tile_b:
        assert tile_b % 128 == 0, "tile_b must be a multiple of 128"
        tile = tile_b
    else:
        tile = B
    num_tiles = pl.cdiv(B, tile)

    out = pl.pallas_call(
        qnet_kernel,
        out_shape=jax.ShapeDtypeStruct((num_tiles, tile), jnp.float32),
        grid=(num_tiles,),
        in_specs=[
            pl.BlockSpec(memory_space=pltpu.MemorySpace.SMEM),   # beta2
            pl.BlockSpec(memory_space=pltpu.MemorySpace.SMEM),   # beta3
            pl.BlockSpec(memory_space=pltpu.MemorySpace.SMEM),   # bias
            pl.BlockSpec((tile, D), lambda i: (i, 0)),           # node_embed tile
            pl.BlockSpec((tile, D), lambda i: (i, 0)),           # agg_embed tile
            pl.BlockSpec((1, D), lambda i: (0, 0)),              # w_agg (resident)
            pl.BlockSpec((1, D), lambda i: (0, 0)),              # w_node (resident)
        ],
        out_specs=pl.BlockSpec((1, tile), lambda i: (i, 0)),     # lane-dense row
        compiler_params=pltpu.CompilerParams(
            dimension_semantics=("parallel",),
            vmem_limit_bytes=32 * 1024 * 1024),
    )(beta2, beta3, bias, node_embed, agg_embed, w_agg, w_node)

    # (num_tiles, tile) row-major flatten preserves row order; rows >= B are
    # garbage from the partial tail block and are sliced off.
    return out.reshape(-1)[:B].reshape(B, 1)


def _reference(params, node_embed, agg_embed):
    # Pure-JAX reference mirroring the PyTorch forward exactly.
    v = params["weight_v"]
    g = params["weight_g"]
    w_eff = g * v / jnp.linalg.norm(v, axis=1, keepdims=True)
    combined = jnp.concatenate(
        [params["beta2"] * agg_embed, params["beta3"] * node_embed], axis=1)
    return jnp.maximum(combined, 0.0) @ w_eff.T + params["bias"]


if __name__ == "__main__":
    key = jax.random.PRNGKey(0)
    embed_dim = 64
    B = 2
    keys = jax.random.split(key, 7)

    # --- deterministic parameter init (shapes match QNet.__init__) ---
    beta1 = jax.random.uniform(keys[0], (embed_dim, 1), dtype=jnp.float32)  # unused in forward
    beta2 = jax.random.uniform(keys[1], (1,), dtype=jnp.float32)
    beta3 = jax.random.uniform(keys[2], (1,), dtype=jnp.float32)

    fan_in, fan_out = 2 * embed_dim, 1
    xavier_std = (2.0 / (fan_in + fan_out)) ** 0.5
    weight_v = xavier_std * jax.random.normal(keys[3], (1, 2 * embed_dim), dtype=jnp.float32)
    # weight_norm initializes g to the norm of the initial weight.
    weight_g = jnp.linalg.norm(weight_v, axis=1, keepdims=True)             # (1, 1)
    bound = 1.0 / (fan_in ** 0.5)
    bias = jax.random.uniform(keys[4], (1,), minval=-bound, maxval=bound, dtype=jnp.float32)

    params = dict(beta2=beta2, beta3=beta3,
                  weight_v=weight_v, weight_g=weight_g, bias=bias)

    # --- primary check: tiny batch (module-consistent shape), single tile ---
    node_embed = jax.random.normal(keys[5], (B, embed_dim), dtype=jnp.float32)
    agg_embed = jax.random.normal(keys[6], (B, embed_dim), dtype=jnp.float32)

    out = qnet_forward(params, node_embed, agg_embed)
    out = jax.block_until_ready(out)
    ref = _reference(params, node_embed, agg_embed)
    assert out.shape == (B, 1)
    assert jnp.allclose(out, ref, atol=1e-5, rtol=1e-5), (out, ref)

    # --- secondary check: gridded path with a partial tail block and the
    #     lane-dense multi-row output (grid=(3,), rows 300..383 unspecified) ---
    B2 = 300
    k1, k2 = jax.random.split(keys[0], 2)
    node2 = jax.random.normal(k1, (B2, embed_dim), dtype=jnp.float32)
    agg2 = jax.random.normal(k2, (B2, embed_dim), dtype=jnp.float32)
    out2 = jax.block_until_ready(
        qnet_forward(params, node2, agg2, tile_b=128))   # grid=(3,), tail = 44 rows
    ref2 = _reference(params, node2, agg2)
    assert out2.shape == (B2, 1)
    assert jnp.allclose(out2, ref2, atol=1e-5, rtol=1e-5), (out2, ref2)

    print("KERNEL_OK")
</pallas_src>

<mosaic_0001>
module attributes {stable_mosaic.version = 11 : i64} {
  func.func @qnet_kernel(%arg0: i32, %arg1: memref<1xf32, #tpu.memory_space<smem>>, %arg2: memref<1xf32, #tpu.memory_space<smem>>, %arg3: memref<1xf32, #tpu.memory_space<smem>>, %arg4: memref<2x64xf32, #tpu.memory_space<vmem>>, %arg5: memref<2x64xf32, #tpu.memory_space<vmem>>, %arg6: memref<1x64xf32, #tpu.memory_space<vmem>>, %arg7: memref<1x64xf32, #tpu.memory_space<vmem>>, %arg8: memref<1x2xf32, #tpu.memory_space<vmem>>) attributes {dimension_semantics = [#tpu.dimension_semantics<parallel>], iteration_bounds = array<i64: 1>, scalar_prefetch = 0 : i64, scratch_operands = 0 : i64, tpu.core_type = #tpu.core_type<tc>, window_params = [{transform_indices = @transform_0, window_bounds = array<i64: 1>}, {transform_indices = @transform_1, window_bounds = array<i64: 1>}, {transform_indices = @transform_2, window_bounds = array<i64: 1>}, {transform_indices = @transform_3, window_bounds = array<i64: 2, 64>}, {transform_indices = @transform_4, window_bounds = array<i64: 2, 64>}, {pipeline_mode = #tpu.pipeline_mode<synchronous>, transform_indices = @transform_5, window_bounds = array<i64: 1, 64>}, {pipeline_mode = #tpu.pipeline_mode<synchronous>, transform_indices = @transform_6, window_bounds = array<i64: 1, 64>}, {transform_indices = @transform_7, window_bounds = array<i64: 1, 2>}]} {
    %c0 = arith.constant 0 : index
    %0 = memref.load %arg1[%c0] : memref<1xf32, #tpu.memory_space<smem>>
    %c0_0 = arith.constant 0 : index
    %1 = memref.load %arg2[%c0_0] : memref<1xf32, #tpu.memory_space<smem>>
    %c0_1 = arith.constant 0 : index
    %2 = memref.load %arg3[%c0_1] : memref<1xf32, #tpu.memory_space<smem>>
    %c0_2 = arith.constant 0 : index
    %c0_3 = arith.constant 0 : index
    %3 = vector.load %arg5[%c0_2, %c0_3] : memref<2x64xf32, #tpu.memory_space<vmem>>, vector<2x64xf32>
    %4 = vector.broadcast %0 : f32 to vector<2x64xf32>
    %5 = arith.mulf %4, %3 : vector<2x64xf32>
    %cst = arith.constant 0.000000e+00 : f32
    %6 = vector.broadcast %cst : f32 to vector<2x64xf32>
    %7 = arith.maximumf %5, %6 : vector<2x64xf32>
    %c0_4 = arith.constant 0 : index
    %c0_5 = arith.constant 0 : index
    %8 = vector.load %arg4[%c0_4, %c0_5] : memref<2x64xf32, #tpu.memory_space<vmem>>, vector<2x64xf32>
    %9 = vector.broadcast %1 : f32 to vector<2x64xf32>
    %10 = arith.mulf %9, %8 : vector<2x64xf32>
    %cst_6 = arith.constant 0.000000e+00 : f32
    %11 = vector.broadcast %cst_6 : f32 to vector<2x64xf32>
    %12 = arith.maximumf %10, %11 : vector<2x64xf32>
    %c0_7 = arith.constant 0 : index
    %c0_8 = arith.constant 0 : index
    %13 = vector.load %arg6[%c0_7, %c0_8] : memref<1x64xf32, #tpu.memory_space<vmem>>, vector<1x64xf32>
    %14 = vector.broadcast %13 : vector<1x64xf32> to vector<2x64xf32>
    %15 = arith.mulf %7, %14 : vector<2x64xf32>
    %c0_9 = arith.constant 0 : index
    %c0_10 = arith.constant 0 : index
    %16 = vector.load %arg7[%c0_9, %c0_10] : memref<1x64xf32, #tpu.memory_space<vmem>>, vector<1x64xf32>
    %17 = vector.broadcast %16 : vector<1x64xf32> to vector<2x64xf32>
    %18 = arith.mulf %12, %17 : vector<2x64xf32>
    %19 = arith.addf %15, %18 : vector<2x64xf32>
    %cst_11 = arith.constant dense<0.000000e+00> : vector<2xf32>
    %20 = vector.multi_reduction <add>, %19, %cst_11 [1] : vector<2x64xf32> to vector<2xf32>
    %21 = vector.shape_cast %20 : vector<2xf32> to vector<2x1xf32>
    %22 = vector.broadcast %2 : f32 to vector<2x1xf32>
    %23 = arith.addf %21, %22 : vector<2x1xf32>
    %24 = vector.shape_cast %23 : vector<2x1xf32> to vector<1x2xf32>
    %c0_12 = arith.constant 0 : index
    %c0_13 = arith.constant 0 : index
    %25 = vector.load %arg8[%c0_12, %c0_13] : memref<1x2xf32, #tpu.memory_space<vmem>>, vector<1x2xf32>
    tpu.vector_store %arg8[%c0_12, %c0_13], %24 {strides = array<i32>} : memref<1x2xf32, #tpu.memory_space<vmem>>, vector<1x2xf32>,
    return
  }
  func.func @transform_0(%arg0: i32) -> i32 {
    %c0_i32 = arith.constant 0 : i32
    %c0_i32_0 = arith.constant 0 : i32
    return %c0_i32 : i32
  }
  func.func @transform_1(%arg0: i32) -> i32 {
    %c0_i32 = arith.constant 0 : i32
    %c0_i32_0 = arith.constant 0 : i32
    return %c0_i32 : i32
  }
  func.func @transform_2(%arg0: i32) -> i32 {
    %c0_i32 = arith.constant 0 : i32
    %c0_i32_0 = arith.constant 0 : i32
    return %c0_i32 : i32
  }
  func.func @transform_3(%arg0: i32) -> (i32, i32) {
    %c0_i32 = arith.constant 0 : i32
    %c0_i32_0 = arith.constant 0 : i32
    return %arg0, %c0_i32 : i32, i32
  }
  func.func @transform_4(%arg0: i32) -> (i32, i32) {
    %c0_i32 = arith.constant 0 : i32
    %c0_i32_0 = arith.constant 0 : i32
    return %arg0, %c0_i32 : i32, i32
  }
  func.func @transform_5(%arg0: i32) -> (i32, i32) {
    %c0_i32 = arith.constant 0 : i32
    %c0_i32_0 = arith.constant 0 : i32
    %c0_i32_1 = arith.constant 0 : i32
    return %c0_i32, %c0_i32_0 : i32, i32
  }
  func.func @transform_6(%arg0: i32) -> (i32, i32) {
    %c0_i32 = arith.constant 0 : i32
    %c0_i32_0 = arith.constant 0 : i32
    %c0_i32_1 = arith.constant 0 : i32
    return %c0_i32, %c0_i32_0 : i32, i32
  }
  func.func @transform_7(%arg0: i32) -> (i32, i32) {
    %c0_i32 = arith.constant 0 : i32
    %c0_i32_0 = arith.constant 0 : i32
    return %arg0, %c0_i32 : i32, i32
  }
}

</mosaic_0001>

<bundles_post_ra>
// kernel: tpu_custom_call.1
= control target key start
LH: loop header
LB: loop body
LE: loop exit
PB: predicated region body
PF: predicated region fallthrough
CT: control target
= control target key end

     0   :  { %s175_s0 = inlined_call_operand.<no memory space> [shape: f32[1], index: 0, kind: input, shape index: {}]   ;;  %s176_s1 = inlined_call_operand.<no memory space> [shape: f32[1], index: 1, kind: input, shape index: {}]   ;;  %s177_s2 = inlined_call_operand.<no memory space> [shape: f32[1], index: 2, kind: input, shape index: {}]   ;;  %s178_s3 = inlined_call_operand.vmem [shape: f32[2,64], index: 3, kind: input, shape index: {}]   ;;  %s179_s4 = inlined_call_operand.vmem [shape: f32[2,64], index: 4, kind: input, shape index: {}]   ;;  %s180_s5 = inlined_call_operand.vmem [shape: f32[1,64], index: 5, kind: input, shape index: {}]   ;;  %s181_s6 = inlined_call_operand.vmem [shape: f32[1,64], index: 6, kind: input, shape index: {}]   ;;  %s182_s7 = inlined_call_operand.hbm [shape: f32[1,2], index: 7, kind: output, shape index: {}]  }
   0x1   :  { %v33_v0 = vld [vmem:[%s179_s4] sm:$0x3]  ;;  %v34_v1 = vstv %s175_s0  ;;  %v38_v3 = vstv %s176_s1 }
   0x2   :  { %v37_v2 = vld [vmem:[%s178_s3] sm:$0x3]  ;;  %v35_v4 = vmul.f32 %v34_v1, %v33_v0 }
   0x3   :  { %v39_v5 = vmul.f32 %v38_v3, %v37_v2  ;;  %v82_v6 = vld [vmem:[%s180_s5] ss:$0 sm:$0xff] }
   0x4   :  { %v83_v7 = vld [vmem:[%s181_s6] ss:$0 sm:$0xff] }
   0x5   :  { %15 = vsyncpa [#allocation6], 0  ;;  %v36_v8 = vmax.f32 %v35_v4, 0.0  ;;  %v40_v9 = vmax.f32 %v39_v5, 0.0  ;;  %vm52_vm0 = vcmask 517120   ;;  %v59_v14 = vlaneseq  ;;  %s110_s3 = smov [#allocation5]  }
   0x6   :  { %v56_v15 = vstv %s177_s2  ;;  %s70_s5 = sshll.u32 %s110_s3, 4  ;;  %s72_s13 = sshll.u32 %s182_s7, 4  ;;  %vm63_vm1 = vcmask 8192   ;;  %s71_s5 = int_to_ptr.vmem [resolvable:$true] %s70_s5  ;;  %s73_s13 = int_to_ptr.hbm [resolvable:$true] %s72_s13 }
   0x7   :  { %v45_v10 = vmul.f32 %v82_v6, %v36_v8  ;;  %v50_v11 = vmul.f32 %v83_v7, %v40_v9  ;;  %v60_v16 = vand.u32 127, %v59_v14 }
   0x9   :  { %v51_v12 = vadd.f32 %v50_v11, %v45_v10 }
   0xb   :  { %v53_v13 = vsel %vm52_vm0, %v51_v12, 0.0 }
   0xc   :  { %54 = vadd.xlane.f32.xlu0 %v53_v13 }
  0x7f   :  { %v55_v17 = vpop.xlane.xlu0 %54 }
  0x80   :  { %v57_v18 = vadd.f32 %v56_v15, %v55_v17 }
  0x82   :  { %v61_v19 = vperm.slane %v57_v18, %v60_v16 }
  0x84   :  { %64 = vst.msk [vmem:[#allocation5] sm:$0x1] %vm63_vm1, %v61_v19 }
  0x85   :  { %75 = dma.vmem_to_hbm [thread:$0]  %s71_s5, 16, %s73_s13, [#allocation6]  }
  0x86   :  { %108 = dma.done.wait [#allocation6], 16  }
  0x87   :  { %109 = vsyncadd [#allocation6], 4294967280 }
  0x88   :  { %80 = vsyncpa [#allocation6], 1 }

</bundles_post_ra>
